<compile_context>
chip_gen: v7x
topology: tpu7x:2x2x1
jax: 0.10.0
libtpu: 0.0.40
codegen_flags: <defaults>
</compile_context>

<pallas_src>
import functools
import re

import jax
import jax.numpy as jnp
from jax import lax
from jax.experimental import pallas as pl
from jax.experimental.pallas import tpu as pltpu


MASK_VAL = -1e30   # masked-logit sentinel; exp(masked - rowmax) underflows to 0.


def _round_up(x, m):
    return ((x + m - 1) // m) * m


def _tpu_config():
    """Generation-aware knobs (bf16 VALU availability, tile caps, VMEM limit)."""
    gen = 0
    try:
        kind = jax.devices()[0].device_kind.lower()
        m = re.search(r"v(\d+)", kind) or re.search(r"tpu(\d+)", kind)
        if m:
            gen = int(m.group(1))
    except Exception:
        gen = 0
    if gen >= 7:       # v7x: 64 MiB VMEM/TC, bf16 VALU, 2 TCs -> want >=2 dst steps
        return dict(compute_dtype=jnp.bfloat16, dst_cap=256, src_cap=512,
                    vmem_limit=48 * 1024 * 1024, force_two_dst_steps=True)
    if gen == 6:       # v6e: 128 MiB VMEM, bf16 VALU
        return dict(compute_dtype=jnp.bfloat16, dst_cap=512, src_cap=512,
                    vmem_limit=100 * 1024 * 1024, force_two_dst_steps=False)
    if gen == 5:       # v5e: 128 MiB VMEM, NO bf16 VALU -> keep plane math f32
        return dict(compute_dtype=jnp.float32, dst_cap=512, src_cap=512,
                    vmem_limit=100 * 1024 * 1024, force_two_dst_steps=False)
    return dict(compute_dtype=jnp.float32, dst_cap=256, src_cap=256,
                vmem_limit=48 * 1024 * 1024, force_two_dst_steps=False)


def _pick_tile(n_pad, cap):
    """Largest multiple of 128 that divides n_pad and is <= cap (n_pad % 128 == 0)."""
    t = max((min(cap, n_pad) // 128) * 128, 128)
    while n_pad % t:
        t -= 128
    return t


# ----------------------------------------------------------------------------
# Prologue kernel: fused GATv2 projection, done ONCE per layer (not per tile).
#   [xl | xr] = x @ [W_l | W_r] + [b_l | b_r]
# Outputs: xl_t [HC, N] (src on lanes, plane dtype), xr [N, HC] (plane dtype),
#          xl_agg [N, HC] bf16 (MXU aggregation feed).
# ----------------------------------------------------------------------------
def _project_kernel(x_ref, w_ref, b_ref, xl_t_ref, xr_ref, xl_agg_ref, *, hc):
    x = x_ref[...].astype(jnp.float32)
    xlr = jnp.dot(x, w_ref[...], preferred_element_type=jnp.float32) + b_ref[...]
    xl = xlr[:, :hc]
    xr = xlr[:, hc:]
    xl_t_ref[...] = jnp.transpose(xl).astype(xl_t_ref.dtype)
    xr_ref[...] = xr.astype(xr_ref.dtype)
    xl_agg_ref[...] = xl.astype(xl_agg_ref.dtype)


def _project(x, wcat, bcat, *, hc, tile, compute_dtype, vmem_limit):
    n_pad, din = x.shape
    kernel = functools.partial(_project_kernel, hc=hc)
    return pl.pallas_call(
        kernel,
        out_shape=(jax.ShapeDtypeStruct((hc, n_pad), compute_dtype),
                   jax.ShapeDtypeStruct((n_pad, hc), compute_dtype),
                   jax.ShapeDtypeStruct((n_pad, hc), jnp.bfloat16)),
        grid_spec=pltpu.PrefetchScalarGridSpec(
            num_scalar_prefetch=0,
            grid=(n_pad // tile,),
            in_specs=[pl.BlockSpec((tile, din), lambda i: (i, 0)),
                      pl.BlockSpec(wcat.shape, lambda i: (0, 0)),
                      pl.BlockSpec(bcat.shape, lambda i: (0, 0))],
            out_specs=(pl.BlockSpec((hc, tile), lambda i: (0, i)),
                       pl.BlockSpec((tile, hc), lambda i: (i, 0)),
                       pl.BlockSpec((tile, hc), lambda i: (i, 0)))),
        compiler_params=pltpu.CompilerParams(
            dimension_semantics=("parallel",),
            vmem_limit_bytes=vmem_limit),
    )(x, wcat, bcat)


# ----------------------------------------------------------------------------
# GATv2 attention/aggregation kernel: dst-tile x src-tile grid, online softmax.
# ----------------------------------------------------------------------------
def _gatv2_flash_kernel(xl_t_ref, xr_ref, xl_agg_ref, adj_w_ref, adj_bias_ref,
                        we_ref, att_ref, bias_ref,
                        out_ref,
                        m_scr, l_scr, acc_scr,
                        *, heads, out_ch, out_pad, compute_dtype, chan_unroll,
                        apply_elu):
    hc = heads * out_ch
    j = pl.program_id(1)                       # source-tile index (reduction axis)

    @pl.when(j == 0)
    def _init():
        m_scr[...] = jnp.full(m_scr.shape, MASK_VAL, jnp.float32)
        l_scr[...] = jnp.zeros(l_scr.shape, jnp.float32)
        acc_scr[...] = jnp.zeros(acc_scr.shape, jnp.float32)

    # Block loads hoisted out of the head/channel loops.
    adj_w = adj_w_ref[...].astype(compute_dtype)             # [td, ts]
    bias_plane = adj_bias_ref[...].astype(jnp.float32)       # 0 / -1e30   [td, ts]
    xr = xr_ref[...]                                          # [td, hc]  plane dtype
    xl_agg = xl_agg_ref[...]                                  # [ts, hc]  bf16
    lane_ids = lax.broadcasted_iota(jnp.int32, (1, hc), 1)

    for h in range(heads):                                    # static, small (8 or 1)
        # --- attention logits, one [td, ts] channel plane at a time.  Channel
        # loop is a fori_loop (bounded live ranges); plane math in bf16 on
        # v6e/v7x, f32 on v5e; logits always accumulate in f32. ---
        def chan_group(g, logits):
            for u in range(chan_unroll):
                c = g * chan_unroll + u
                ch = h * out_ch + c
                xl_c = xl_t_ref[pl.ds(ch, 1), :]                         # [1, ts]
                # dst-side column ch of xr via one-hot masked lane reduce (XLU).
                xr_c = jnp.sum(jnp.where(lane_ids == ch, xr, 0.0),
                               axis=1, keepdims=True)                    # [td, 1]
                we_c = we_ref[0, ch].astype(compute_dtype)               # SMEM scalar
                att_c = att_ref[h, c].astype(compute_dtype)              # SMEM scalar
                s = xl_c + xr_c + adj_w * we_c
                s = jnp.maximum(s, 0.2 * s)                              # leaky_relu
                logits = logits + (s * att_c).astype(jnp.float32)
            return logits

        logits = lax.fori_loop(0, out_ch // chan_unroll, chan_group, bias_plane)

        # --- online softmax over the source axis (flash-style m/l/acc). ---
        m_old = m_scr[:, h:h + 1]
        m_new = jnp.maximum(m_old, jnp.max(logits, axis=1, keepdims=True))
        scale = jnp.exp(m_old - m_new)                                   # <= 1
        p = jnp.exp(logits - m_new)                                      # masked -> 0
        l_scr[:, h:h + 1] = l_scr[:, h:h + 1] * scale + jnp.sum(p, axis=1,
                                                                keepdims=True)
        m_scr[:, h:h + 1] = m_new

        # --- weighted aggregation on the MXU (bf16 feeds, f32 accumulate). ---
        pv = jnp.dot(p.astype(jnp.bfloat16),
                     xl_agg[:, h * out_ch:(h + 1) * out_ch],
                     preferred_element_type=jnp.float32)                 # [td, C]
        acc_scr[:, h * out_ch:(h + 1) * out_ch] = (
            acc_scr[:, h * out_ch:(h + 1) * out_ch] * scale + pv)

    @pl.when(j == pl.num_programs(1) - 1)
    def _finalize():
        outs = []
        for h in range(heads):
            inv_l = pl.reciprocal(l_scr[:, h:h + 1], approx=True)        # EUP
            outs.append(acc_scr[:, h * out_ch:(h + 1) * out_ch] * inv_l)
        res = jnp.concatenate(outs, axis=1) + bias_ref[...]              # [td, hc]
        if apply_elu:
            res = jnp.where(res > 0, res, jnp.exp(res) - 1.0)
        if out_pad > hc:                                                  # lane-dense
            res = jnp.concatenate(
                [res, jnp.zeros((res.shape[0], out_pad - hc), res.dtype)], axis=1)
        out_ref[...] = res.astype(out_ref.dtype)                          # full store


def gatv2_layer(x, adj_w, adj_bias, params, *, heads, out_ch, apply_elu, cfg,
                max_dst_tile=None, max_src_tile=None):
    n_pad = x.shape[0]
    hc = heads * out_ch
    out_pad = _round_up(hc, 128)
    compute_dtype = cfg["compute_dtype"]

    tile_dst = _pick_tile(n_pad, min(max_dst_tile or n_pad, cfg["dst_cap"]))
    if cfg["force_two_dst_steps"] and n_pad >= 256 and n_pad // tile_dst < 2:
        tile_dst = _pick_tile(n_pad, n_pad // 2)      # >=2 steps -> megacore shards
    tile_src = _pick_tile(n_pad, min(max_src_tile or n_pad, cfg["src_cap"]))

    # Hoisted fused projection (run once, not per dst tile).
    wcat = jnp.concatenate([params["wl"], params["wr"]], axis=1)   # [Din, 2HC]
    bcat = jnp.concatenate([params["bl"], params["br"]], axis=1)   # [1, 2HC]
    xl_t, xr, xl_agg = _project(x, wcat, bcat, hc=hc, tile=tile_dst,
                                compute_dtype=compute_dtype,
                                vmem_limit=cfg["vmem_limit"])

    chan_unroll = 4 if out_ch % 4 == 0 else (2 if out_ch % 2 == 0 else 1)
    kernel = functools.partial(
        _gatv2_flash_kernel, heads=heads, out_ch=out_ch, out_pad=out_pad,
        compute_dtype=compute_dtype, chan_unroll=chan_unroll, apply_elu=apply_elu)

    grid_spec = pltpu.PrefetchScalarGridSpec(
        num_scalar_prefetch=0,
        grid=(n_pad // tile_dst, n_pad // tile_src),
        in_specs=[
            pl.BlockSpec((hc, tile_src), lambda i, j: (0, j)),            # xl_t
            pl.BlockSpec((tile_dst, hc), lambda i, j: (i, 0)),            # xr
            pl.BlockSpec((tile_src, hc), lambda i, j: (j, 0)),            # xl (MXU)
            pl.BlockSpec((tile_dst, tile_src), lambda i, j: (i, j)),      # adj_w
            pl.BlockSpec((tile_dst, tile_src), lambda i, j: (i, j)),      # adj_bias
            pl.BlockSpec(memory_space=pltpu.MemorySpace.SMEM),            # we  [1,HC]
            pl.BlockSpec(memory_space=pltpu.MemorySpace.SMEM),            # att [H,C]
            pl.BlockSpec((1, hc), lambda i, j: (0, 0)),                   # out bias
        ],
        out_specs=pl.BlockSpec((tile_dst, out_pad), lambda i, j: (i, 0)),
        scratch_shapes=[pltpu.VMEM((tile_dst, heads), jnp.float32),       # m
                        pltpu.VMEM((tile_dst, heads), jnp.float32),       # l
                        pltpu.VMEM((tile_dst, hc), jnp.float32)],         # acc
    )
    return pl.pallas_call(
        kernel,
        out_shape=jax.ShapeDtypeStruct((n_pad, out_pad), jnp.float32),
        grid_spec=grid_spec,
        compiler_params=pltpu.CompilerParams(
            dimension_semantics=("parallel", "arbitrary"),
            vmem_limit_bytes=cfg["vmem_limit"]),
    )(xl_t, xr, xl_agg, adj_w, adj_bias, params["we"], params["att"], params["bias"])


# ----------------------------------------------------------------------------
# Head kernel: global_mean_pool + Linear + log_softmax
# ----------------------------------------------------------------------------
def _pool_head_kernel(h_ref, pool_ref, wlin_ref, blin_ref, out_ref):
    hG = jnp.dot(pool_ref[...], h_ref[...], preferred_element_type=jnp.float32)
    logits = jnp.dot(hG, wlin_ref[...],
                     preferred_element_type=jnp.float32) + blin_ref[...]
    m = jnp.max(logits, axis=1, keepdims=True)
    z = logits - m
    lse = jnp.log(jnp.sum(jnp.exp(z), axis=1, keepdims=True))
    out_ref[...] = z - lse


def pool_head(h, pool, wlin, blin):
    b = pool.shape[0]
    dim_out = wlin.shape[1]
    vmem = pl.BlockSpec(memory_space=pltpu.MemorySpace.VMEM)
    return pl.pallas_call(
        _pool_head_kernel,
        out_shape=jax.ShapeDtypeStruct((b, dim_out), jnp.float32),
        in_specs=[vmem] * 4,
        out_specs=vmem,
    )(h, pool, wlin, blin)


# ----------------------------------------------------------------------------
# Plain-JAX glue: dense adjacency (weights + 0/-1e30 bias plane), pooling, params.
# ----------------------------------------------------------------------------
def build_dense_adj(edge_index, edge_weight, num_nodes, n_pad):
    src, dst = edge_index[0], edge_index[1]
    mask = jnp.zeros((n_pad, n_pad), jnp.float32).at[dst, src].set(1.0)
    adj_w = jnp.zeros((n_pad, n_pad), jnp.float32).at[dst, src].set(edge_weight)
    # GATv2Conv default: drop existing self-loops, add self-loops with
    # edge_attr = per-node mean of remaining incoming edge attrs (fill='mean').
    eye = jnp.eye(n_pad, dtype=jnp.float32)
    mask = mask * (1.0 - eye)
    adj_w = adj_w * (1.0 - eye)
    non_self = (src != dst).astype(jnp.float32)
    deg = jnp.zeros((n_pad,), jnp.float32).at[dst].add(non_self)
    wsum = jnp.zeros((n_pad,), jnp.float32).at[dst].add(edge_weight * non_self)
    mean_w = wsum / jnp.maximum(deg, 1.0)
    # Every row (incl. padded rows) gets a self-loop -> softmax denominator > 0.
    mask = mask + eye
    adj_w = adj_w + jnp.diag(mean_w)
    adj_bias = jnp.where(mask > 0, 0.0, MASK_VAL)
    # bf16 storage halves HBM/VMEM traffic of the two dense [N, N] arrays.
    return adj_w.astype(jnp.bfloat16), adj_bias.astype(jnp.bfloat16)


def build_pool_matrix(batch, num_graphs):
    p = (batch[None, :] == jnp.arange(num_graphs, dtype=batch.dtype)[:, None])
    p = p.astype(jnp.float32)
    return p / jnp.maximum(jnp.sum(p, axis=1, keepdims=True), 1.0)


def init_gatv2(key, din, out_ch, heads):
    ks = jax.random.split(key, 5)
    hc = heads * out_ch
    return {
        "wl":   jax.random.normal(ks[0], (din, hc), jnp.float32) * 0.1,
        "bl":   jnp.zeros((1, hc), jnp.float32),
        "wr":   jax.random.normal(ks[1], (din, hc), jnp.float32) * 0.1,
        "br":   jnp.zeros((1, hc), jnp.float32),
        "we":   jax.random.normal(ks[2], (1, hc), jnp.float32) * 0.1,   # lin_edge
        "att":  jax.random.normal(ks[3], (heads, out_ch), jnp.float32) * 0.1,
        "bias": jax.random.normal(ks[4], (1, hc), jnp.float32) * 0.01,
    }


def gat_forward(x, edge_index, batch, edge_weight,
                p1, p2, wlin, blin, *, heads, dim_h, num_graphs,
                node_pad=128, max_dst_tile=None, max_src_tile=None):
    cfg = _tpu_config()
    n = x.shape[0]
    node_pad = _round_up(max(node_pad, 128), 128)
    n_pad = _round_up(n, node_pad)

    x_p = jnp.zeros((n_pad, x.shape[1]), jnp.float32).at[:n].set(x)
    batch_p = jnp.full((n_pad,), num_graphs, jnp.int32).at[:n].set(batch)
    adj_w, adj_bias = build_dense_adj(edge_index, edge_weight, n, n_pad)

    # TODO(synk): F.dropout(p=0.6/0.5) is stochastic in training mode; here it is
    # the inference-mode identity.
    h = gatv2_layer(x_p, adj_w, adj_bias, p1, heads=heads, out_ch=dim_h,
                    apply_elu=True, cfg=cfg,
                    max_dst_tile=max_dst_tile, max_src_tile=max_src_tile)
    h = h[:, :heads * dim_h]                                   # drop lane padding
    h = gatv2_layer(h, adj_w, adj_bias, p2, heads=1, out_ch=dim_h,
                    apply_elu=False, cfg=cfg,
                    max_dst_tile=max_dst_tile, max_src_tile=max_src_tile)
    h = h[:, :dim_h]
    pool = build_pool_matrix(batch_p, num_graphs)
    return pool_head(h, pool, wlin, blin)


# ----------------------------------------------------------------------------
if __name__ == "__main__":
    key = jax.random.PRNGKey(0)
    dim_in, dim_h, dim_out, heads = 4, 8, 3, 8
    nodes_per_graph, num_graphs = 8, 2
    N = nodes_per_graph * num_graphs

    # Bidirectional ring edges inside each graph (no self-loops, no duplicates).
    src_list, dst_list = [], []
    for g in range(num_graphs):
        off = g * nodes_per_graph
        for i in range(nodes_per_graph):
            j = (i + 1) % nodes_per_graph
            src_list += [off + i, off + j]
            dst_list += [off + j, off + i]
    edge_index = jnp.array([src_list, dst_list], dtype=jnp.int32)   # [2, E]
    E = edge_index.shape[1]

    k_x, k_w, k_p1, k_p2, k_lin = jax.random.split(key, 5)
    x = jax.random.normal(k_x, (N, dim_in), jnp.float32)
    edge_weight = jax.random.uniform(k_w, (E,), jnp.float32)
    batch = jnp.repeat(jnp.arange(num_graphs, dtype=jnp.int32), nodes_per_graph)

    params1 = init_gatv2(k_p1, dim_in, dim_h, heads)        # GATv2Conv(dim_in, dim_h, heads=8)
    params2 = init_gatv2(k_p2, dim_h * heads, dim_h, 1)     # GATv2Conv(dim_h*heads, dim_h, heads=1)
    wlin = jax.random.normal(k_lin, (dim_h, dim_out), jnp.float32) * 0.1
    blin = jnp.zeros((1, dim_out), jnp.float32)

    # node_pad=256 / 128-row tiles force a 2x2 (dst x src) grid even at toy N=16,
    # exercising padding, the online-softmax accumulation and the parallel dst
    # axis (real sizes use the generation-dependent default caps).
    out = gat_forward(x, edge_index, batch, edge_weight,
                      params1, params2, wlin, blin,
                      heads=heads, dim_h=dim_h, num_graphs=num_graphs,
                      node_pad=256, max_dst_tile=128, max_src_tile=128)
    out = jax.block_until_ready(out)
    assert out.shape == (num_graphs, dim_out)
    assert bool(jnp.all(jnp.isfinite(out)))
    print("KERNEL_OK")
</pallas_src>

<mosaic_0001>
module attributes {stable_mosaic.version = 11 : i64} {
  func.func @_project_kernel(%arg0: i32, %arg1: memref<128x4xf32, #tpu.memory_space<vmem>>, %arg2: memref<4x128xf32, #tpu.memory_space<vmem>>, %arg3: memref<1x128xf32, #tpu.memory_space<vmem>>, %arg4: memref<64x128xf32, #tpu.memory_space<vmem>>, %arg5: memref<128x64xf32, #tpu.memory_space<vmem>>, %arg6: memref<128x64xbf16, #tpu.memory_space<vmem>>) attributes {dimension_semantics = [#tpu.dimension_semantics<parallel>], iteration_bounds = array<i64: 2>, scalar_prefetch = 0 : i64, scratch_operands = 0 : i64, tpu.core_type = #tpu.core_type<tc>, window_params = [{transform_indices = @transform_0, window_bounds = array<i64: 128, 4>}, {pipeline_mode = #tpu.pipeline_mode<synchronous>, transform_indices = @transform_1, window_bounds = array<i64: 4, 128>}, {pipeline_mode = #tpu.pipeline_mode<synchronous>, transform_indices = @transform_2, window_bounds = array<i64: 1, 128>}, {transform_indices = @transform_3, window_bounds = array<i64: 64, 128>}, {transform_indices = @transform_4, window_bounds = array<i64: 128, 64>}, {transform_indices = @transform_5, window_bounds = array<i64: 128, 64>}]} {
    %c0 = arith.constant 0 : index
    %c0_0 = arith.constant 0 : index
    %0 = vector.load %arg1[%c0, %c0_0] : memref<128x4xf32, #tpu.memory_space<vmem>>, vector<128x4xf32>
    %c0_1 = arith.constant 0 : index
    %c0_2 = arith.constant 0 : index
    %1 = vector.load %arg2[%c0_1, %c0_2] : memref<4x128xf32, #tpu.memory_space<vmem>>, vector<4x128xf32>
    %cst = arith.constant dense<0.000000e+00> : vector<128x128xf32>
    %2 = tpu.matmul %0, %1, %cst {dimension_numbers = #tpu.dot_dimension_numbers<[1], [0], [0], [1], [0, 0, 1, 1], [], []>} : vector<128x4xf32>, vector<4x128xf32>, vector<128x128xf32> -> vector<128x128xf32>
    %c0_3 = arith.constant 0 : index
    %c0_4 = arith.constant 0 : index
    %3 = vector.load %arg3[%c0_3, %c0_4] : memref<1x128xf32, #tpu.memory_space<vmem>>, vector<1x128xf32>
    %4 = vector.broadcast %3 : vector<1x128xf32> to vector<128x128xf32>
    %5 = arith.addf %2, %4 : vector<128x128xf32>
    %6 = vector.extract_strided_slice %5 {offsets = [0, 0], sizes = [128, 64], strides = [1, 1]} : vector<128x128xf32> to vector<128x64xf32>
    %7 = vector.extract_strided_slice %5 {offsets = [0, 64], sizes = [128, 64], strides = [1, 1]} : vector<128x128xf32> to vector<128x64xf32>
    %8 = tpu.transpose %6, [1, 0] : vector<128x64xf32> -> vector<64x128xf32>
    %c0_5 = arith.constant 0 : index
    %c0_6 = arith.constant 0 : index
    %9 = vector.load %arg4[%c0_5, %c0_6] : memref<64x128xf32, #tpu.memory_space<vmem>>, vector<64x128xf32>
    tpu.vector_store %arg4[%c0_5, %c0_6], %8 {strides = array<i32>} : memref<64x128xf32, #tpu.memory_space<vmem>>, vector<64x128xf32>,
    %c0_7 = arith.constant 0 : index
    %c0_8 = arith.constant 0 : index
    %10 = vector.load %arg5[%c0_7, %c0_8] : memref<128x64xf32, #tpu.memory_space<vmem>>, vector<128x64xf32>
    tpu.vector_store %arg5[%c0_7, %c0_8], %7 {strides = array<i32>} : memref<128x64xf32, #tpu.memory_space<vmem>>, vector<128x64xf32>,
    %11 = arith.truncf %6 : vector<128x64xf32> to vector<128x64xbf16>
    %c0_9 = arith.constant 0 : index
    %c0_10 = arith.constant 0 : index
    %12 = vector.load %arg6[%c0_9, %c0_10] : memref<128x64xbf16, #tpu.memory_space<vmem>>, vector<128x64xbf16>
    tpu.vector_store %arg6[%c0_9, %c0_10], %11 {strides = array<i32>} : memref<128x64xbf16, #tpu.memory_space<vmem>>, vector<128x64xbf16>,
    return
  }
  func.func @transform_0(%arg0: i32) -> (i32, i32) {
    %c0_i32 = arith.constant 0 : i32
    %c0_i32_0 = arith.constant 0 : i32
    return %arg0, %c0_i32 : i32, i32
  }
  func.func @transform_1(%arg0: i32) -> (i32, i32) {
    %c0_i32 = arith.constant 0 : i32
    %c0_i32_0 = arith.constant 0 : i32
    %c0_i32_1 = arith.constant 0 : i32
    return %c0_i32, %c0_i32_0 : i32, i32
  }
  func.func @transform_2(%arg0: i32) -> (i32, i32) {
    %c0_i32 = arith.constant 0 : i32
    %c0_i32_0 = arith.constant 0 : i32
    %c0_i32_1 = arith.constant 0 : i32
    return %c0_i32, %c0_i32_0 : i32, i32
  }
  func.func @transform_3(%arg0: i32) -> (i32, i32) {
    %c0_i32 = arith.constant 0 : i32
    %c0_i32_0 = arith.constant 0 : i32
    return %c0_i32, %arg0 : i32, i32
  }
  func.func @transform_4(%arg0: i32) -> (i32, i32) {
    %c0_i32 = arith.constant 0 : i32
    %c0_i32_0 = arith.constant 0 : i32
    return %arg0, %c0_i32 : i32, i32
  }
  func.func @transform_5(%arg0: i32) -> (i32, i32) {
    %c0_i32 = arith.constant 0 : i32
    %c0_i32_0 = arith.constant 0 : i32
    return %arg0, %c0_i32 : i32, i32
  }
}

</mosaic_0001>

<bundles_post_ra>
// kernel: tpu_custom_call.1
= control target key start
LH: loop header
LB: loop body
LE: loop exit
PB: predicated region body
PF: predicated region fallthrough
CT: control target
= control target key end

     0   :  { %11 = vsyncpa [#allocation3], 0  ;;  %s1344_s0 = inlined_call_operand.vmem [shape: f32[256,4], index: 0, kind: input, shape index: {}]   ;;  %s1345_s1 = inlined_call_operand.vmem [shape: f32[4,128], index: 1, kind: input, shape index: {}]   ;;  %s1346_s2 = inlined_call_operand.vmem [shape: f32[1,128], index: 2, kind: input, shape index: {}]   ;;  %s1347_s3 = inlined_call_operand.hbm [shape: f32[64,256], index: 3, kind: output, shape index: {0}]   ;;  %s1348_s4 = inlined_call_operand.vmem [shape: f32[256,64], index: 4, kind: output, shape index: {1}]   ;;  %s1349_s5 = inlined_call_operand.vmem [shape: bf16[256,64], index: 5, kind: output, shape index: {2}]  }
   0x1   :  { %13 = vsyncpa [#allocation3 + $0x1], 0  ;;  %s1071_s18 = smov 0   ;;  %s1073_s19 = smov 0  }
   0x2   :  { %s1075_s20 = smov 0   ;;  %s1077_s21 = smov 0  }
   0x3 LB: > { %s1092_s22 = sadd.s32 4294967295, %s1034_s21   ;;  %s819_s23 = sadd.s32 4294967294, %s1034_s21   ;;  %s1034_s21 = sphi %s1077_s21, %s1355_s21   ;;  %s1030_s20 = sphi %s1075_s20, %s1354_s20   ;;  %s1026_s19 = sphi %s1073_s19, %s1353_s19   ;;  %s1022_s18 = sphi %s1071_s18, %s1352_s18  }
   0x4   : > { %s1096_s24 = sadd.s32 1, %s1034_s21   ;;  %s94_s25 = sadd.s32 1, %s1030_s20 }
   0x5   : > { %s91_s26 = ssub.s32 %s1034_s21, %s1096_s24  ;;  %p104_p0 = scmp.ne.s32.totalorder %s1030_s20, %s1026_s19 }
   0x6   : > { %p92_p1 = scmp.eq.s32.totalorder %s91_s26, 0  ;;  %p105_p2 = scmp.eq.s32.totalorder %s1092_s22, 1 }
   0x7   : > { %p110_p3 = scmp.ne.s32.totalorder %s1026_s19, %s1022_s18  ;;  %p111_p4 = scmp.eq.s32.totalorder %s819_s23, 1 }
   0x8   : > { %s1107_s27 = scalar_select %p92_p1, %s1030_s20, %s94_s25  }
   0x9   : > { %p1109_p5 = por %p105_p2, %p104_p0  ;;  %p1113_p6 = por %p111_p4, %p110_p3 }
   0xa   : > { %p822_p7 = scmp.ge.s32.totalorder %s1034_s21, 1  ;;  %p196_p8 = scmp.lt.s32.totalorder %s1034_s21, 3 }
   0xc   : > { %p197_p9 = pnand %p822_p7, %p196_p8 }
   0xd   : > { %v268_v0 = vld [vmem:[%s1345_s1] sm:$0xf] (!%p197_p9)  ;;  %vm325_vm0 = vcmask (!%p197_p9), 1043456   ;;  %s824_s7 = sshll.u32 (!%p197_p9), %s1092_s22, 4  ;;  %vm276_vm1 = vcmask (!%p197_p9), 31744   ;;  %vm659_vm2 = vcmask (!%p197_p9), 519168  }
   0xe   : > { %200 = sbr.rel (%p197_p9) target bundleno = 426 (0x1aa), region = 32  ;;  %901 = vmatprep.subr.msk.mxu0 (!%p197_p9), %vm325_vm0, %v268_v0  ;;  %p235_p10 = scmp.lt.s32.totalorder (!%p197_p9), %s824_s7, 31  ;;  %927 = vmatprep.subr.msk.mxu1 (!%p197_p9), %vm325_vm0, %v268_v0  ;;  %v1150_v17 = vld [vmem:[%s1346_s2] ss:$0 sm:$0xff] (!%p197_p9)  ;;  %vm578_vm3 = vcmask (!%p197_p9), 523264  }
   0xf   : > { %902 = vmatpush3.msk.msra.mxu0 (!%p197_p9), %vm325_vm0, %v268_v0  ;;  %928 = vmatpush3.msk.msra.mxu1 (!%p197_p9), %vm325_vm0, %v268_v0  ;;  %s1036_s23 = smov (!%p197_p9), 64   ;;  %s217_s6 = sand.u32 (!%p197_p9), 1, %s1026_s19  }
  0x10   : > { %s865_s10 = sshll.u32 (!%p197_p9), %s1092_s22, 7  ;;  %s1295_s22 = scalar_lea.sflag (!%p197_p9), [#allocation3], %s217_s6 }
  0x11   : > { %s1288_s13 = scalar_lea.hbm (!%p197_p9), %s1347_s3, %s865_s10  ;;  %s1037_s15 = smov (!%p197_p9), [#allocation2]  }
  0x12   : > { %s976_s16 = sshll.u32 (!%p197_p9), %s1037_s15, 4  ;;  %s977_s16 = int_to_ptr.vmem [resolvable:$false] %s976_s16 }
  0x15   : > { %s1357_s7 = smov (!%p235_p10, %s824_s7), 31 }
  0x16   : > { %s825_s8 = sshll.u32 %s1357_s7, 3  ;;  %s829_s14 = sshll.u32 %s1357_s7, 2 }
  0x17   : > { %s238_s11 = scalar_lea.vmem %s1344_s0, %s825_s8  ;;  %s1160_s17 = scalar_lea.vmem %s1349_s5, %s829_s14 }
  0x18   : > { %v252_v1 = vld [vmem:[%s238_s11] sm:$0xff]  ;;  %v253_v2 = vld [vmem:[%s238_s11 + $0x8] sm:$0xff]  ;;  %v254_v5 = vld [vmem:[%s238_s11 + $0x10] sm:$0xff]  ;;  %s1245_s30 = scalar_lea.vmem %s1348_s4, %s825_s8  ;;  %s823_s7 = sshll.u32 %s217_s6, 6 }
  0x19   : > { %v260_v3 = vld [vmem:[%s238_s11 + $0x40] sm:$0xff]  ;;  %903 = vmatprep.mubr.msk.f32.mxu0 %vm276_vm1, %v252_v1  ;;  %v261_v4 = vld [vmem:[%s238_s11 + $0x48] sm:$0xff]  ;;  %v262_v6 = vld [vmem:[%s238_s11 + $0x50] sm:$0xff]  ;;  %s1258_s8 = scalar_lea.vmem [#allocation2], %s823_s7 }
  0x1a   : > { %915 = vmatprep.mubr.msk.f32.mxu1 %vm276_vm1, %v260_v3  ;;  %904 = vmatmul.mubr.msk.f32.vlgmr.msra.gmra.mrb[0].mxu0 %vm276_vm1, %v253_v2  ;;  %v255_v7 = vld [vmem:[%s238_s11 + $0x18] sm:$0xff]  ;;  %v256_v9 = vld [vmem:[%s238_s11 + $0x20] sm:$0xff]  ;;  %v257_v11 = vld [vmem:[%s238_s11 + $0x28] sm:$0xff]  ;;  %s699_s9 = sshll.u32 %s1258_s8, 4  ;;  %s1280_s9 = int_to_ptr.vmem [resolvable:$true] %s699_s9 }
  0x1b   : > { %916 = vmatmul.mubr.msk.f32.vlgmr.msra.gmra.mrb[0].mxu1 %vm276_vm1, %v261_v4  ;;  %906 = vmatprep.mubr.msk.f32.mxu0 %vm276_vm1, %v254_v5  ;;  %v263_v8 = vld [vmem:[%s238_s11 + $0x58] sm:$0xff]  ;;  %v264_v10 = vld [vmem:[%s238_s11 + $0x60] sm:$0xff]  ;;  %v265_v12 = vld [vmem:[%s238_s11 + $0x68] sm:$0xff]  ;;  %s972_s14 = scalar_lea.vmem %s1280_s9, 1024  ;;  %p979_p0 = scmp.lt.s32.totalorder %s1280_s9, %s977_s16 }
  0x1c   : > { %918 = vmatprep.mubr.msk.f32.mxu1 %vm276_vm1, %v262_v6  ;;  %v258_v13 = vld [vmem:[%s238_s11 + $0x30] sm:$0xff]  ;;  %v259_v15 = vld [vmem:[%s238_s11 + $0x38] sm:$0xff]  ;;  %p973_p11 = scmp.ne.s32.totalorder %s1280_s9, %s972_s14 }
  0x1d   : > { %v266_v14 = vld [vmem:[%s238_s11 + $0x70] sm:$0xff]  ;;  %v267_v16 = vld [vmem:[%s238_s11 + $0x78] sm:$0xff] }
  0x1e   : > { %907 = vmatmul.mubr.msk.f32.gmra.mrb[2].mxu0 %vm276_vm1, %v255_v7  ;;  %p974_p12 = pnand %p973_p11, %p1109_p5 }
  0x1f   : > { %919 = vmatmul.mubr.msk.f32.gmra.mrb[2].mxu1 %vm276_vm1, %v263_v8  ;;  %909 = vmatprep.mubr.msk.f32.mxu0 %vm276_vm1, %v256_v9 }
  0x20   : > { %921 = vmatprep.mubr.msk.f32.mxu1 %vm276_vm1, %v264_v10  ;;  %p975_p13 = pneg %p974_p12 }
  0x22   : > { %910 = vmatmul.mubr.msk.f32.gmra.mrb[4].mxu0 %vm276_vm1, %v257_v11 }
  0x23   : > { %922 = vmatmul.mubr.msk.f32.gmra.mrb[4].mxu1 %vm276_vm1, %v265_v12  ;;  %912 = vmatprep.mubr.msk.f32.mxu0 %vm276_vm1, %v258_v13 }
  0x24   : > { %924 = vmatprep.mubr.msk.f32.mxu1 %vm276_vm1, %v266_v14 }
  0x26   : > { %913 = vmatmul.mubr.msk.f32.gmra.mrb[6].mxu0 %vm276_vm1, %v259_v15 }
  0x27   : > { %925 = vmatmul.mubr.msk.f32.gmra.mrb[6].mxu1 %vm276_vm1, %v267_v16 }
  0xed   : > { %v905_v18 = vpop.f32.mrb[0].mxu0 }
  0xee   : > { %v917_v19 = vpop.f32.mrb[0].mxu1  ;;  %v401_v20 = vadd.f32 %v905_v18, %v1150_v17  ;;  %v395_v21 = vpop.f32.mrb[1].mxu0 }
  0xef   : > { %v1155_v22 = vadd.f32 %v917_v19, %v1150_v17  ;;  %v435_v23 = vpop.f32.mrb[1].mxu1  ;;  %v396_v24 = vadd.f32 %v1150_v17, %v395_v21 }
  0xf0   : > { %v1164_v25 = vadd.f32 %v1150_v17, %v435_v23  ;;  %v869_v26 = vpack.c.bf16 %v401_v20, %v401_v20  ;;  %532 = vrot.lane.b32.xlu1 %v401_v20, %s1036_s23 }
  0xf1   : > { %v877_v27 = vpack.c.bf16 %v1155_v22, %v1155_v22  ;;  %v868_v28 = vpack.c.bf16 %v396_v24, %v396_v24  ;;  %474 = vxpose.xlu0.b32.start [1/16] (narrow) %v396_v24, 64  ;;  %v908_v30 = vpop.f32.mrb[2].mxu0 }
  0xf2   : > { %v876_v29 = vpack.c.bf16 %v1164_v25, %v1164_v25  ;;  %v920_v31 = vpop.f32.mrb[2].mxu1  ;;  %661 = vst.msk [vmem:[%s1160_s17 + $0x4] sm:$0xf] %vm659_vm2, %v869_v26  ;;  %v411_v32 = vadd.f32 %v908_v30, %v1150_v17  ;;  %v405_v33 = vpop.f32.mrb[3].mxu0 }
  0xf3   : > { %669 = vst.msk [vmem:[%s1160_s17 + $0x24] sm:$0xf] %vm659_vm2, %v877_v27  ;;  %v1177_v34 = vadd.f32 %v920_v31, %v1150_v17  ;;  %v445_v35 = vpop.f32.mrb[3].mxu1  ;;  %660 = vst.msk [vmem:[%s1160_s17] sm:$0xf] %vm659_vm2, %v868_v28  ;;  %v406_v36 = vadd.f32 %v1150_v17, %v405_v33 }
  0xf4   : > { %668 = vst.msk [vmem:[%s1160_s17 + $0x20] sm:$0xf] %vm659_vm2, %v876_v29  ;;  %v446_v37 = vadd.f32 %v1150_v17, %v445_v35  ;;  %548 = vrot.lane.b32.xlu1 %v1155_v22, %s1036_s23  ;;  %v871_v38 = vpack.c.bf16 %v411_v32, %v411_v32 }
  0xf5   : > { %v879_v39 = vpack.c.bf16 %v1177_v34, %v1177_v34  ;;  %475 = vxpose.xlu0.b32.cont [2/16] (narrow) %v401_v20, 64  ;;  %v870_v40 = vpack.c.bf16 %v406_v36, %v406_v36  ;;  %v911_v41 = vpop.f32.mrb[4].mxu0 }
  0xf6   : > { %v878_v42 = vpack.c.bf16 %v446_v37, %v446_v37  ;;  %v923_v43 = vpop.f32.mrb[4].mxu1  ;;  %663 = vst.msk [vmem:[%s1160_s17 + $0xc] sm:$0xf] %vm659_vm2, %v871_v38  ;;  %v421_v44 = vadd.f32 %v911_v41, %v1150_v17  ;;  %v415_v45 = vpop.f32.mrb[5].mxu0 }
  0xf7   : > { %671 = vst.msk [vmem:[%s1160_s17 + $0x2c] sm:$0xf] %vm659_vm2, %v879_v39  ;;  %v461_v46 = vadd.f32 %v923_v43, %v1150_v17  ;;  %v455_v47 = vpop.f32.mrb[5].mxu1  ;;  %662 = vst.msk [vmem:[%s1160_s17 + $0x8] sm:$0xf] %vm659_vm2, %v870_v40  ;;  %v416_v48 = vadd.f32 %v1150_v17, %v415_v45 }
  0xf8   : > { %670 = vst.msk [vmem:[%s1160_s17 + $0x28] sm:$0xf] %vm659_vm2, %v878_v42  ;;  %v456_v49 = vadd.f32 %v1150_v17, %v455_v47  ;;  %530 = vrot.lane.b32.xlu1 %v396_v24, %s1036_s23  ;;  %v873_v50 = vpack.c.bf16 %v421_v44, %v421_v44 }
  0xf9   : > { %v881_v51 = vpack.c.bf16 %v461_v46, %v461_v46  ;;  %476 = vxpose.xlu0.b32.cont [3/16] (narrow) %v406_v36, 64  ;;  %v872_v52 = vpack.c.bf16 %v416_v48, %v416_v48  ;;  %v914_v53 = vpop.f32.mrb[6].mxu0 }
  0xfa   : > { %v880_v54 = vpack.c.bf16 %v456_v49, %v456_v49  ;;  %v926_v55 = vpop.f32.mrb[6].mxu1  ;;  %665 = vst.msk [vmem:[%s1160_s17 + $0x14] sm:$0xf] %vm659_vm2, %v873_v50  ;;  %v431_v56 = vadd.f32 %v914_v53, %v1150_v17  ;;  %v425_v57 = vpop.f32.mrb[7].mxu0 }
  0xfb   : > { %673 = vst.msk [vmem:[%s1160_s17 + $0x34] sm:$0xf] %vm659_vm2, %v881_v51  ;;  %v471_v58 = vadd.f32 %v926_v55, %v1150_v17  ;;  %v465_v59 = vpop.f32.mrb[7].mxu1  ;;  %664 = vst.msk [vmem:[%s1160_s17 + $0x10] sm:$0xf] %vm659_vm2, %v872_v52  ;;  %v426_v60 = vadd.f32 %v1150_v17, %v425_v57 }
  0xfc   : > { %672 = vst.msk [vmem:[%s1160_s17 + $0x30] sm:$0xf] %vm659_vm2, %v880_v54  ;;  %v466_v61 = vadd.f32 %v1150_v17, %v465_v59  ;;  %546 = vrot.lane.b32.xlu1 %v1164_v25, %s1036_s23  ;;  %v875_v62 = vpack.c.bf16 %v431_v56, %v431_v56 }
  0xfd   : > { %v883_v63 = vpack.c.bf16 %v471_v58, %v471_v58  ;;  %477 = vxpose.xlu0.b32.cont [4/16] (narrow) %v411_v32, 64  ;;  %v874_v0 = vpack.c.bf16 %v426_v60, %v426_v60 }
  0xfe   : > { %v882_v1 = vpack.c.bf16 %v466_v61, %v466_v61  ;;  %667 = vst.msk [vmem:[%s1160_s17 + $0x1c] sm:$0xf] %vm659_vm2, %v875_v62 }
  0xff   : > { %675 = vst.msk [vmem:[%s1160_s17 + $0x3c] sm:$0xf] %vm659_vm2, %v883_v63  ;;  %666 = vst.msk [vmem:[%s1160_s17 + $0x18] sm:$0xf] %vm659_vm2, %v874_v0 }
 0x100   : > { %674 = vst.msk [vmem:[%s1160_s17 + $0x38] sm:$0xf] %vm659_vm2, %v882_v1  ;;  %536 = vrot.lane.b32.xlu1 %v411_v32, %s1036_s23  ;;  %s978_s17 = scalar_lea.vmem %s977_s16, 2048 }
 0x101   : > { %478 = vxpose.xlu0.b32.cont [5/16] (narrow) %v416_v48, 64  ;;  %p980_p1 = scmp.lt.s32.totalorder %s978_s17, %s972_s14 }
 0x103   : > { %p981_p2 = por %p980_p1, %p979_p0 }
 0x104   : > { %552 = vrot.lane.b32.xlu1 %v1177_v34, %s1036_s23 }
 0x105   : > { %479 = vxpose.xlu0.b32.cont [6/16] (narrow) %v421_v44, 64  ;;  %p982_p3 = pnand %p981_p2, %p975_p13 }
 0x108   : > { %534 = vrot.lane.b32.xlu1 %v406_v36, %s1036_s23 }
 0x109   : > { %480 = vxpose.xlu0.b32.cont [7/16] (narrow) %v426_v60, 64 }
 0x10c   : > { %550 = vrot.lane.b32.xlu1 %v446_v37, %s1036_s23 }
 0x10d   : > { %481 = vxpose.xlu0.b32.cont [8/16] (narrow) %v431_v56, 64 }
 0x110   : > { %540 = vrot.lane.b32.xlu1 %v421_v44, %s1036_s23 }
 0x111   : > { %482 = vxpose.xlu0.b32.cont [9/16] (narrow) %v1164_v25, 64 }
 0x114   : > { %556 = vrot.lane.b32.xlu1 %v461_v46, %s1036_s23 }
 0x115   : > { %483 = vxpose.xlu0.b32.cont [10/16] (narrow) %v1155_v22, 64 }
 0x118   : > { %538 = vrot.lane.b32.xlu1 %v416_v48, %s1036_s23 }
 0x119   : > { %484 = vxpose.xlu0.b32.cont [11/16] (narrow) %v446_v37, 64 }
 0x11c   : > { %554 = vrot.lane.b32.xlu1 %v456_v49, %s1036_s23 }
 0x11d   : > { %485 = vxpose.xlu0.b32.cont [12/16] (narrow) %v1177_v34, 64 }
 0x120   : > { %544 = vrot.lane.b32.xlu1 %v431_v56, %s1036_s23 }
 0x121   : > { %486 = vxpose.xlu0.b32.cont [13/16] (narrow) %v456_v49, 64 }
 0x124   : > { %542 = vrot.lane.b32.xlu1 %v426_v60, %s1036_s23 }
 0x125   : > { %487 = vxpose.xlu0.b32.cont [14/16] (narrow) %v461_v46, 64 }
 0x128   : > { %558 = vrot.lane.b32.xlu1 %v466_v61, %s1036_s23 }
 0x129   : > { %488 = vxpose.xlu0.b32.cont [15/16] (narrow) %v466_v61, 64 }
 0x12c   : > { %560 = vrot.lane.b32.xlu1 %v471_v58, %s1036_s23 }
 0x12d   : > { %489 = vxpose.xlu0.b32.end [16/16] (narrow) %v471_v58, 64 }
 0x162   : > { %v533_v2 = vpop.permute.xlu1 %532 }
 0x163   : > { %580 = vst.msk [vmem:[%s1245_s30 + $0x8] sm:$0xff] %vm578_vm3, %v533_v2 }
 0x166   : > { %v549_v3 = vpop.permute.xlu1 %548 }
 0x167   : > { %588 = vst.msk [vmem:[%s1245_s30 + $0x48] sm:$0xff] %vm578_vm3, %v549_v3 }
 0x16a   : > { %v531_v4 = vpop.permute.xlu1 %530 }
 0x16b   : > { %579 = vst.msk [vmem:[%s1245_s30] sm:$0xff] %vm578_vm3, %v531_v4 }
 0x16e   : > { %v547_v5 = vpop.permute.xlu1 %546 }
 0x16f   : > { %587 = vst.msk [vmem:[%s1245_s30 + $0x40] sm:$0xff] %vm578_vm3, %v547_v5 }
 0x171   : > { %v490_v6 = vpop.trf.xlu0 }
 0x172   : > { %v537_v7 = vpop.permute.xlu1 %536  ;;  %506 = vst [vmem:[%s1258_s8] sm:$0xff] %v490_v6 }
 0x173   : > { %582 = vst.msk [vmem:[%s1245_s30 + $0x18] sm:$0xff] %vm578_vm3, %v537_v7 }
 0x175   : > { %v491_v8 = vpop.trf.xlu0 }
 0x176   : > { %v553_v9 = vpop.permute.xlu1 %552  ;;  %507 = vst [vmem:[%s1258_s8 + $0x8] sm:$0xff] %v491_v8 }
 0x177   : > { %590 = vst.msk [vmem:[%s1245_s30 + $0x58] sm:$0xff] %vm578_vm3, %v553_v9 }
 0x179   : > { %v492_v10 = vpop.trf.xlu0 }
 0x17a   : > { %v535_v11 = vpop.permute.xlu1 %534  ;;  %508 = vst [vmem:[%s1258_s8 + $0x10] sm:$0xff] %v492_v10 }
 0x17b   : > { %581 = vst.msk [vmem:[%s1245_s30 + $0x10] sm:$0xff] %vm578_vm3, %v535_v11 }
 0x17d   : > { %v493_v12 = vpop.trf.xlu0 }
 0x17e   : > { %v551_v13 = vpop.permute.xlu1 %550  ;;  %509 = vst [vmem:[%s1258_s8 + $0x18] sm:$0xff] %v493_v12 }
 0x17f   : > { %589 = vst.msk [vmem:[%s1245_s30 + $0x50] sm:$0xff] %vm578_vm3, %v551_v13 }
 0x181   : > { %v494_v14 = vpop.trf.xlu0 }
 0x182   : > { %v541_v15 = vpop.permute.xlu1 %540  ;;  %510 = vst [vmem:[%s1258_s8 + $0x20] sm:$0xff] %v494_v14 }
 0x183   : > { %584 = vst.msk [vmem:[%s1245_s30 + $0x28] sm:$0xff] %vm578_vm3, %v541_v15 }
 0x185   : > { %v495_v16 = vpop.trf.xlu0 }
 0x186   : > { %v557_v17 = vpop.permute.xlu1 %556  ;;  %511 = vst [vmem:[%s1258_s8 + $0x28] sm:$0xff] %v495_v16 }
 0x187   : > { %592 = vst.msk [vmem:[%s1245_s30 + $0x68] sm:$0xff] %vm578_vm3, %v557_v17 }
 0x189   : > { %v496_v18 = vpop.trf.xlu0 }
 0x18a   : > { %v539_v19 = vpop.permute.xlu1 %538  ;;  %512 = vst [vmem:[%s1258_s8 + $0x30] sm:$0xff] %v496_v18 }
 0x18b   : > { %583 = vst.msk [vmem:[%s1245_s30 + $0x20] sm:$0xff] %vm578_vm3, %v539_v19 }
 0x18d   : > { %v497_v20 = vpop.trf.xlu0 }
 0x18e   : > { %v555_v21 = vpop.permute.xlu1 %554  ;;  %513 = vst [vmem:[%s1258_s8 + $0x38] sm:$0xff] %v497_v20 }
 0x18f   : > { %591 = vst.msk [vmem:[%s1245_s30 + $0x60] sm:$0xff] %vm578_vm3, %v555_v21 }
 0x190   : > { %985 = shalt.err (!%p982_p3)
}
 0x191   : > { %s986_s23 = scalar_lea.hbm %s1288_s13, 1024  ;;  %s990_s6 = scalar_lea.hbm %s1347_s3, 2048 }
 0x192   : > { %p987_p4 = scmp.ne.s32.totalorder %s1288_s13, %s986_s23  ;;  %p991_p9 = scmp.lt.u32.totalorder %s1288_s13, %s1347_s3 }
 0x193   : > { %p992_p10 = scmp.lt.u32.totalorder %s990_s6, %s986_s23  ;;  %p994_p12 = scmp.lt.u32.totalorder %s986_s23, %s1288_s13 }
 0x194   : > { %p988_p7 = pnand %p987_p4, %p1109_p5 }
 0x195   : > { %p993_p11 = por %p992_p10, %p991_p9 }
 0x196   : > { %p989_p8 = pneg %p988_p7 }
 0x197   : > { %p995_p13 = por %p994_p12, %p993_p11 }
 0x199   : > { %p996_p0 = pnand %p995_p13, %p989_p8 }
 0x19b   : > { %999 = shalt.err (!%p996_p0)
}
 0x19c   : > { %s1038_s10 = smov 128   ;;  %s1039_s11 = smov 256   ;;  %v545_v22 = vpop.permute.xlu1 %544 }
 0x19d   : > { %s1040_s12 = smov 8   ;;  %586 = vst.msk [vmem:[%s1245_s30 + $0x38] sm:$0xff] %vm578_vm3, %v545_v22 }
 0x19e   : > { %929 = dma.vmem_to_hbm [thread:$0]  (%p1109_p5), %s1280_s9, 1024, %s1288_s13, %s1295_s22, %s1038_s10, %s1039_s11, %s1040_s12  }
 0x1a0   : > { %v543_v23 = vpop.permute.xlu1 %542 }
 0x1a1   : > { %585 = vst.msk [vmem:[%s1245_s30 + $0x30] sm:$0xff] %vm578_vm3, %v543_v23 }
 0x1a4   : > { %v559_v24 = vpop.permute.xlu1 %558 }
 0x1a5   : > { %593 = vst.msk [vmem:[%s1245_s30 + $0x70] sm:$0xff] %vm578_vm3, %v559_v24 }
 0x1a8   : > { %v561_v25 = vpop.permute.xlu1 %560 }
 0x1a9   : > { %594 = vst.msk [vmem:[%s1245_s30 + $0x78] sm:$0xff] %vm578_vm3, %v561_v25 }
 0x1aa PF: > { %p935_p1 = scmp.ge.s32.totalorder %s1034_s21, 2  ;;  %s722_s14 = sand.u32 1, %s1022_s18  }
 0x1ab   : > { %s723_s28 = scalar_lea.sflag [#allocation3], %s722_s14 }
 0x1ac   : > { %p932_p5 = pnand %p935_p1, %p1113_p6 }
 0x1ae   : > { %1017 = dma.done.wait (!%p932_p5), %s723_s28, 1024  }
 0x1af   : > { %1019 = vsyncadd (!%p932_p5), %s723_s28, 4294966272  ;;  %p16_p2 = scmp.ge.s32.totalorder %s1096_s24, 4   ;;  %s1352_s18 = smov %s1026_s19 }
 0x1b0   : > { %s1353_s19 = smov %s1030_s20  ;;  %s1354_s20 = smov %s1107_s27 }
 0x1b1   : > { %s1355_s21 = smov %s1096_s24  ;;  %18 = sbr.rel (!%p16_p2) target bundleno = 3 (0x3), region = 91 }
 0x1b8   :  { %744 = vsyncpa [#allocation3], 1 }
 0x1b9   :  { %746 = vsyncpa [#allocation3 + $0x1], 1 }

</bundles_post_ra>
